<compile_context>
chip_gen: v5e
topology: v5e:2x2
jax: 0.10.0
libtpu: 0.0.40
codegen_flags: <defaults>
</compile_context>

<pallas_src>
import functools

import jax
import jax.numpy as jnp
from jax import lax
from jax.experimental import pallas as pl
from jax.experimental.pallas import tpu as pltpu


def _round_up(x, m):
    return ((x + m - 1) // m) * m


def _attention_head_kernel(seed_ref, x_ref, wq_ref, wk_ref, wv_ref, o_ref, *,
                           head_dim, causal, p_dropout, training):
    # Blocks: x (Bb, T, E) native dtype; wq/wk/wv (E, Hp); out (Bb, T, Hp).
    x = x_ref[...]                       # native dtype straight to the MXU
    bb, t, _ = x.shape
    in_dtype = x.dtype

    # Projections: MXU with f32 accumulation.
    proj_dn = (((2,), (0,)), ((), ()))
    q = lax.dot_general(x, wq_ref[...], proj_dn, preferred_element_type=jnp.float32)
    k = lax.dot_general(x, wk_ref[...], proj_dn, preferred_element_type=jnp.float32)
    v = lax.dot_general(x, wv_ref[...], proj_dn, preferred_element_type=jnp.float32)

    # Fold 1/sqrt(head_dim) into q (cheaper than scaling the TxT score matrix).
    q = q * jnp.float32(1.0 / (head_dim ** 0.5))

    # Scores: contract head dim, batch over b — no explicit k transpose.
    score_dn = (((2,), (2,)), ((0,), (0,)))
    s = lax.dot_general(q.astype(in_dtype), k.astype(in_dtype), score_dn,
                        preferred_element_type=jnp.float32)      # (Bb, T, T) f32

    if causal:
        row = lax.broadcasted_iota(jnp.int32, (t, t), 0)
        col = lax.broadcasted_iota(jnp.int32, (t, t), 1)
        s = jnp.where((col <= row)[None], s, jnp.float32(-1e30))  # tril mask

    # Numerically stable softmax, kept in f32. The 1/denom normalization (and
    # the dropout 1/(1-p) scale) are applied after a@v as a (Bb,T,1) multiply.
    m = jnp.max(s, axis=-1, keepdims=True)
    e = jnp.exp(s - m)
    denom = jnp.sum(e, axis=-1, keepdims=True)                    # (Bb, T, 1)

    p = e
    scale = 1.0
    if training and p_dropout > 0.0:
        # Counter-based hash PRNG: global element id mixed with the user seed.
        # TODO(synk): random stream differs from torch's RNG; keep-prob and
        # 1/(1-p) scaling semantics are identical.
        b0 = pl.program_id(0) * bb
        bg = b0 + lax.broadcasted_iota(jnp.int32, (bb, t, t), 0)
        r = lax.broadcasted_iota(jnp.int32, (bb, t, t), 1)
        c = lax.broadcasted_iota(jnp.int32, (bb, t, t), 2)
        idx = ((bg * t + r) * t + c).astype(jnp.uint32)
        u = seed_ref[0].astype(jnp.uint32) + idx * jnp.uint32(0x9E3779B9)
        u = u ^ (u >> 16)
        u = u * jnp.uint32(0x85EBCA6B)
        u = u ^ (u >> 13)
        u = u * jnp.uint32(0xC2B2AE35)
        u = u ^ (u >> 16)
        thresh = jnp.uint32(min(int(round(p_dropout * (2 ** 32))), 0xFFFFFFFF))
        p = jnp.where(u >= thresh, e, jnp.float32(0.0))
        scale = 1.0 / (1.0 - p_dropout)

    av_dn = (((2,), (1,)), ((0,), (0,)))
    z = lax.dot_general(p.astype(in_dtype), v.astype(in_dtype), av_dn,
                        preferred_element_type=jnp.float32)       # (Bb, T, Hp)
    z = z * (scale / denom)        # softmax norm + dropout scale, one multiply
    o_ref[...] = z.astype(o_ref.dtype)


def attention_head(x, wq, wk, wv, *, causal=False, p_dropout=0.5,
                   training=False, seed=0, block_b=None):
    """x: [B, T, E]; wq/wk/wv: [E, H] (PyTorch weights pre-transposed).
    Returns [B, T, H]."""
    B, T, E = x.shape
    H = wq.shape[1]

    # Lane-dense output / MXU-friendly N: pad head dim to a multiple of 128.
    Hp = _round_up(H, 128)
    if Hp != H:
        pad = ((0, 0), (0, Hp - H))
        wq = jnp.pad(wq, pad)
        wk = jnp.pad(wk, pad)
        wv = jnp.pad(wv, pad)

    # Fewer, fatter grid steps: several batch rows per step (amortizes the
    # ~0.35us per-step overhead; grid is a sequential loop on a TensorCore).
    if block_b is None:
        block_b = min(B, 8)
        while B % block_b:
            block_b -= 1
    assert B % block_b == 0

    kernel = functools.partial(
        _attention_head_kernel, head_dim=H, causal=causal,
        p_dropout=p_dropout, training=training)
    seed_arr = jnp.array([seed], dtype=jnp.int32)

    out = pl.pallas_call(
        kernel,
        out_shape=jax.ShapeDtypeStruct((B, T, Hp), x.dtype),
        grid_spec=pltpu.PrefetchScalarGridSpec(
            num_scalar_prefetch=1,          # dropout seed lands in SMEM
            grid=(B // block_b,),
            in_specs=[
                pl.BlockSpec((block_b, T, E), lambda b, seed: (b, 0, 0)),
                pl.BlockSpec((E, Hp), lambda b, seed: (0, 0)),
                pl.BlockSpec((E, Hp), lambda b, seed: (0, 0)),
                pl.BlockSpec((E, Hp), lambda b, seed: (0, 0)),
            ],
            out_specs=pl.BlockSpec((block_b, T, Hp), lambda b, seed: (b, 0, 0)),
        ),
        compiler_params=pltpu.CompilerParams(
            dimension_semantics=("parallel",)),   # batch blocks independent
    )(seed_arr, x, wq, wk, wv)

    # TODO(synk): for long contexts (T >~ 1k) switch the score/softmax stage to
    # a query-tiled online-softmax (flash) formulation so VMEM scales O(tq*T).
    return out[..., :H] if Hp != H else out


def _reference_eval(x, wq, wk, wv, *, causal):
    """Pure-JAX reference of the PyTorch forward in eval mode (dropout off)."""
    H = wq.shape[1]
    q = x @ wq
    k = x @ wk
    v = x @ wv
    s = jnp.einsum("bth,bsh->bts", q, k) / (H ** 0.5)
    if causal:
        T = x.shape[1]
        mask = jnp.tril(jnp.ones((T, T), dtype=bool))
        s = jnp.where(mask[None], s, -jnp.inf)
    a = jax.nn.softmax(s, axis=-1)
    return a @ v


if __name__ == "__main__":
    # Small shapes consistent with the module's forward: [B, T, embed_dim]
    B, T, E, H = 2, 8, 32, 16          # max_context_len == T here
    causal = True
    p_dropout = 0.5

    key = jax.random.PRNGKey(0)
    kx, kq, kk, kv = jax.random.split(key, 4)

    x = jax.random.normal(kx, (B, T, E), dtype=jnp.float32)

    # nn.Linear-style init: weight [H, E] ~ U(-1/sqrt(E), 1/sqrt(E)), then
    # transposed to [E, H] for the kernel.
    bound = 1.0 / (E ** 0.5)
    wq = jax.random.uniform(kq, (H, E), jnp.float32, -bound, bound).T
    wk = jax.random.uniform(kk, (H, E), jnp.float32, -bound, bound).T
    wv = jax.random.uniform(kv, (H, E), jnp.float32, -bound, bound).T

    # Eval-mode run (dropout identity) — check against pure-JAX reference.
    z_eval = attention_head(x, wq, wk, wv, causal=causal,
                            p_dropout=p_dropout, training=False)
    jax.block_until_ready(z_eval)
    z_ref = _reference_eval(x, wq, wk, wv, causal=causal)
    assert z_eval.shape == (B, T, H)
    assert jnp.allclose(z_eval, z_ref, atol=1e-5, rtol=1e-5), \
        float(jnp.max(jnp.abs(z_eval - z_ref)))

    # Training-mode run exercises the in-kernel dropout path.
    z_train = attention_head(x, wq, wk, wv, causal=causal,
                             p_dropout=p_dropout, training=True, seed=123)
    jax.block_until_ready(z_train)
    assert z_train.shape == (B, T, H)

    print("KERNEL_OK")
</pallas_src>

<mosaic_0001>
module attributes {stable_mosaic.version = 11 : i64} {
  func.func @_attention_head_kernel(%arg0: i32, %arg1: memref<1xi32, #tpu.memory_space<smem>>, %arg2: memref<2x8x32xf32, #tpu.memory_space<vmem>>, %arg3: memref<32x128xf32, #tpu.memory_space<vmem>>, %arg4: memref<32x128xf32, #tpu.memory_space<vmem>>, %arg5: memref<32x128xf32, #tpu.memory_space<vmem>>, %arg6: memref<2x8x128xf32, #tpu.memory_space<vmem>>) attributes {dimension_semantics = [#tpu.dimension_semantics<parallel>], iteration_bounds = array<i64: 1>, scalar_prefetch = 1 : i64, scratch_operands = 0 : i64, tpu.core_type = #tpu.core_type<tc>, window_params = [{transform_indices = @transform_0, window_bounds = array<i64: 2, 8, 32>}, {pipeline_mode = #tpu.pipeline_mode<synchronous>, transform_indices = @transform_1, window_bounds = array<i64: 32, 128>}, {pipeline_mode = #tpu.pipeline_mode<synchronous>, transform_indices = @transform_2, window_bounds = array<i64: 32, 128>}, {pipeline_mode = #tpu.pipeline_mode<synchronous>, transform_indices = @transform_3, window_bounds = array<i64: 32, 128>}, {transform_indices = @transform_4, window_bounds = array<i64: 2, 8, 128>}]} {
    %c0 = arith.constant 0 : index
    %c0_0 = arith.constant 0 : index
    %c0_1 = arith.constant 0 : index
    %0 = vector.load %arg2[%c0, %c0_0, %c0_1] : memref<2x8x32xf32, #tpu.memory_space<vmem>>, vector<2x8x32xf32>
    %c0_2 = arith.constant 0 : index
    %c0_3 = arith.constant 0 : index
    %1 = vector.load %arg3[%c0_2, %c0_3] : memref<32x128xf32, #tpu.memory_space<vmem>>, vector<32x128xf32>
    %cst = arith.constant dense<0.000000e+00> : vector<2x8x128xf32>
    %2 = tpu.matmul %0, %1, %cst {dimension_numbers = #tpu.dot_dimension_numbers<[2], [0], [0, 1], [1], [0, 0, 0, 1, 1, 1], [], []>} : vector<2x8x32xf32>, vector<32x128xf32>, vector<2x8x128xf32> -> vector<2x8x128xf32>
    %c0_4 = arith.constant 0 : index
    %c0_5 = arith.constant 0 : index
    %3 = vector.load %arg4[%c0_4, %c0_5] : memref<32x128xf32, #tpu.memory_space<vmem>>, vector<32x128xf32>
    %cst_6 = arith.constant dense<0.000000e+00> : vector<2x8x128xf32>
    %4 = tpu.matmul %0, %3, %cst_6 {dimension_numbers = #tpu.dot_dimension_numbers<[2], [0], [0, 1], [1], [0, 0, 0, 1, 1, 1], [], []>} : vector<2x8x32xf32>, vector<32x128xf32>, vector<2x8x128xf32> -> vector<2x8x128xf32>
    %c0_7 = arith.constant 0 : index
    %c0_8 = arith.constant 0 : index
    %5 = vector.load %arg5[%c0_7, %c0_8] : memref<32x128xf32, #tpu.memory_space<vmem>>, vector<32x128xf32>
    %cst_9 = arith.constant dense<0.000000e+00> : vector<2x8x128xf32>
    %6 = tpu.matmul %0, %5, %cst_9 {dimension_numbers = #tpu.dot_dimension_numbers<[2], [0], [0, 1], [1], [0, 0, 0, 1, 1, 1], [], []>} : vector<2x8x32xf32>, vector<32x128xf32>, vector<2x8x128xf32> -> vector<2x8x128xf32>
    %cst_10 = arith.constant 2.500000e-01 : f32
    %7 = vector.broadcast %cst_10 : f32 to vector<2x8x128xf32>
    %8 = arith.mulf %2, %7 : vector<2x8x128xf32>
    %cst_11 = arith.constant dense<0.000000e+00> : vector<2x8x8xf32>
    %9 = tpu.matmul %8, %4, %cst_11 {dimension_numbers = #tpu.dot_dimension_numbers<[2], [2], [1], [1], [0, 0, 0, 1, 1, 1], [0], [0]>} : vector<2x8x128xf32>, vector<2x8x128xf32>, vector<2x8x8xf32> -> vector<2x8x8xf32>
    %10 = tpu.iota {dimensions = array<i32: 0>} : vector<8x8xi32>
    %11 = tpu.iota {dimensions = array<i32: 1>} : vector<8x8xi32>
    %12 = arith.cmpi sle, %11, %10 : vector<8x8xi32>
    %13 = vector.shape_cast %12 : vector<8x8xi1> to vector<1x8x8xi1>
    %cst_12 = arith.constant -1.000000e+30 : f32
    %14 = vector.shape_cast %13 : vector<1x8x8xi1> to vector<1x8x8xi1>
    %15 = vector.broadcast %14 : vector<1x8x8xi1> to vector<2x8x8xi1>
    %16 = vector.broadcast %cst_12 : f32 to vector<2x8x8xf32>
    %17 = arith.select %15, %9, %16 : vector<2x8x8xi1>, vector<2x8x8xf32>
    %cst_13 = arith.constant dense<0xFF800000> : vector<2x8xf32>
    %18 = vector.multi_reduction <maximumf>, %17, %cst_13 [2] : vector<2x8x8xf32> to vector<2x8xf32>
    %19 = vector.shape_cast %18 : vector<2x8xf32> to vector<2x8x1xf32>
    %20 = vector.broadcast %19 : vector<2x8x1xf32> to vector<2x8x8xf32>
    %21 = arith.subf %17, %20 : vector<2x8x8xf32>
    %22 = math.exp %21 : vector<2x8x8xf32>
    %cst_14 = arith.constant dense<0.000000e+00> : vector<2x8xf32>
    %23 = vector.multi_reduction <add>, %22, %cst_14 [2] : vector<2x8x8xf32> to vector<2x8xf32>
    %24 = vector.shape_cast %23 : vector<2x8xf32> to vector<2x8x1xf32>
    %cst_15 = arith.constant dense<0.000000e+00> : vector<2x8x128xf32>
    %25 = tpu.matmul %22, %6, %cst_15 {dimension_numbers = #tpu.dot_dimension_numbers<[2], [1], [1], [2], [0, 0, 0, 1, 1, 2], [0], [0]>} : vector<2x8x8xf32>, vector<2x8x128xf32>, vector<2x8x128xf32> -> vector<2x8x128xf32>
    %cst_16 = arith.constant 1.000000e+00 : f32
    %26 = vector.broadcast %cst_16 : f32 to vector<2x8x1xf32>
    %27 = arith.divf %26, %24 : vector<2x8x1xf32>
    %28 = vector.broadcast %27 : vector<2x8x1xf32> to vector<2x8x128xf32>
    %29 = arith.mulf %25, %28 : vector<2x8x128xf32>
    %c0_17 = arith.constant 0 : index
    %c0_18 = arith.constant 0 : index
    %c0_19 = arith.constant 0 : index
    %30 = vector.load %arg6[%c0_17, %c0_18, %c0_19] : memref<2x8x128xf32, #tpu.memory_space<vmem>>, vector<2x8x128xf32>
    tpu.vector_store %arg6[%c0_17, %c0_18, %c0_19], %29 {strides = array<i32>} : memref<2x8x128xf32, #tpu.memory_space<vmem>>, vector<2x8x128xf32>,
    return
  }
  func.func @transform_0(%arg0: i32, %arg1: memref<1xi32, #tpu.memory_space<smem>>) -> (i32, i32, i32) {
    %c0_i32 = arith.constant 0 : i32
    %c0_i32_0 = arith.constant 0 : i32
    %c0_i32_1 = arith.constant 0 : i32
    return %arg0, %c0_i32, %c0_i32_0 : i32, i32, i32
  }
  func.func @transform_1(%arg0: i32, %arg1: memref<1xi32, #tpu.memory_space<smem>>) -> (i32, i32) {
    %c0_i32 = arith.constant 0 : i32
    %c0_i32_0 = arith.constant 0 : i32
    %c0_i32_1 = arith.constant 0 : i32
    return %c0_i32, %c0_i32_0 : i32, i32
  }
  func.func @transform_2(%arg0: i32, %arg1: memref<1xi32, #tpu.memory_space<smem>>) -> (i32, i32) {
    %c0_i32 = arith.constant 0 : i32
    %c0_i32_0 = arith.constant 0 : i32
    %c0_i32_1 = arith.constant 0 : i32
    return %c0_i32, %c0_i32_0 : i32, i32
  }
  func.func @transform_3(%arg0: i32, %arg1: memref<1xi32, #tpu.memory_space<smem>>) -> (i32, i32) {
    %c0_i32 = arith.constant 0 : i32
    %c0_i32_0 = arith.constant 0 : i32
    %c0_i32_1 = arith.constant 0 : i32
    return %c0_i32, %c0_i32_0 : i32, i32
  }
  func.func @transform_4(%arg0: i32, %arg1: memref<1xi32, #tpu.memory_space<smem>>) -> (i32, i32, i32) {
    %c0_i32 = arith.constant 0 : i32
    %c0_i32_0 = arith.constant 0 : i32
    %c0_i32_1 = arith.constant 0 : i32
    return %arg0, %c0_i32, %c0_i32_0 : i32, i32, i32
  }
}

</mosaic_0001>

<bundles_post_ra>
// kernel: tpu_custom_call.1
= control target key start
LH: loop header
LB: loop body
LE: loop exit
PB: predicated region body
PF: predicated region fallthrough
CT: control target
= control target key end

     0   :  { %11 = vsyncpa [#allocation5], 0  ;;  %s574_s0 = inlined_call_operand.<no memory space> [shape: s32[1], index: 0, kind: input, shape index: {}]   ;;  %s575_s1 = inlined_call_operand.hbm [shape: f32[2,8,32], index: 1, kind: input, shape index: {}]   ;;  %s576_s2 = inlined_call_operand.hbm [shape: f32[32,128], index: 2, kind: input, shape index: {}]   ;;  %s577_s3 = inlined_call_operand.hbm [shape: f32[32,128], index: 3, kind: input, shape index: {}]   ;;  %s578_s4 = inlined_call_operand.hbm [shape: f32[32,128], index: 4, kind: input, shape index: {}]   ;;  %s579_s5 = inlined_call_operand.hbm [shape: f32[2,8,128], index: 5, kind: output, shape index: {}]  }
   0x1   :  { %12 = vsyncpa [#allocation8], 0 }
   0x2   :  { %13 = vsyncpa [#allocation11], 0 }
   0x3   :  { %14 = vsyncpa [#allocation6], 0  ;;  %s32_s19 = sshll.u32 %s576_s2, 4  ;;  %s495_s20 = smov [#allocation7]   ;;  %s33_s19 = int_to_ptr.hbm [resolvable:$true] %s32_s19 }
   0x4   :  { %s34_s21 = sshll.u32 %s495_s20, 4  ;;  %s19_s24 = sshll.u32 %s575_s1, 4  ;;  %s35_s21 = int_to_ptr.vmem [resolvable:$true] %s34_s21  ;;  %s20_s24 = int_to_ptr.hbm [resolvable:$true] %s19_s24 }
   0x5   :  { %s496_s25 = smov 128   ;;  %s497_s26 = smov 8  }
   0x6   :  { %40 = dma.hbm_to_vmem [thread:$0]  %s33_s19, 512, %s35_s21, [#allocation8], %s496_s25, %s496_s25, %s497_s26  }
   0x7   :  { %s498_s27 = smov [#allocation4]   ;;  %s45_s2 = sshll.u32 %s577_s3, 4  ;;  %s46_s2 = int_to_ptr.hbm [resolvable:$true] %s45_s2 }
   0x8   :  { %s21_s28 = sshll.u32 %s498_s27, 4  ;;  %s58_s7 = sshll.u32 %s578_s4, 4  ;;  %s22_s28 = int_to_ptr.vmem [resolvable:$true] %s21_s28  ;;  %s59_s7 = int_to_ptr.hbm [resolvable:$true] %s58_s7 }
   0x9   :  { %27 = dma.hbm_to_vmem [thread:$0]  %s20_s24, 256, %s22_s28, [#allocation5], %s496_s25, %s496_s25, %s497_s26  }
   0xa   :  { %s499_s8 = smov [#allocation9]   ;;  %s500_s10 = smov [#allocation10]  }
   0xb   :  { %s47_s9 = sshll.u32 %s499_s8, 4  ;;  %s60_s3 = sshll.u32 %s500_s10, 4  ;;  %s48_s9 = int_to_ptr.vmem [resolvable:$true] %s47_s9  ;;  %s61_s3 = int_to_ptr.vmem [resolvable:$true] %s60_s3 }
   0xc   :  { %53 = dma.hbm_to_vmem [thread:$0]  %s46_s2, 512, %s48_s9, [#allocation8], %s496_s25, %s496_s25, %s497_s26  }
   0xd   :  { %66 = dma.hbm_to_vmem [thread:$0]  %s59_s7, 512, %s61_s3, [#allocation11], %s496_s25, %s496_s25, %s497_s26  }
   0xe   :  { %487 = dma.done.wait [#allocation5], 256  }
   0xf   :  { %488 = vsyncadd [#allocation5], 4294967040 }
  0x10   :  { %489 = dma.done.wait [#allocation8], 1024  }
  0x11   :  { %490 = vsyncadd [#allocation8], 4294966272 }
  0x12   :  { %491 = dma.done.wait [#allocation11], 512  }
  0x13   :  { %492 = vsyncadd [#allocation11], 4294966784  ;;  %v122_v0 = vld [vmem:[#allocation9 + $0x18] sm:$0xff]  ;;  %v121_v2 = vld [vmem:[#allocation9 + $0x10] sm:$0xff]  ;;  %vm89_vm0 = vcmask 261120   ;;  %v215_v20 = vlaneseq  ;;  %vm224_vm2 = vcmask 64512  }
  0x14   :  { %v88_v1 = vld [vmem:[#allocation7 + $0x18] sm:$0xff]  ;;  %135 = vmatpush.msra.mxu1 %v122_v0  ;;  %v87_v3 = vld [vmem:[#allocation7 + $0x10] sm:$0xff]  ;;  %v120_v4 = vld [vmem:[#allocation9 + $0x8] sm:$0xff]  ;;  %s501_s4 = smov [#allocation12]   ;;  %s329_s14 = sshll.u32 %s579_s5, 4  ;;  %s330_s14 = int_to_ptr.hbm [resolvable:$true] %s329_s14 }
  0x15   :  { %108 = vmatpush.msra.mxu0 %v88_v1  ;;  %v86_v5 = vld [vmem:[#allocation7 + $0x8] sm:$0xff]  ;;  %v119_v6 = vld [vmem:[#allocation9] sm:$0xff]  ;;  %v83_v8 = vld [vmem:[#allocation4] sm:$0xff]  ;;  %v216_v21 = vshrl.u32 %v215_v20, 7  ;;  %v218_v22 = vand.u32 127, %v215_v20  ;;  %s327_s11 = sshll.u32 %s501_s4, 4  ;;  %s328_s11 = int_to_ptr.vmem [resolvable:$true] %s327_s11 }
  0x16   :  { %136 = vmatpush.msra.mxu1 %v121_v2  ;;  %v85_v7 = vld [vmem:[#allocation7] sm:$0xff]  ;;  %v84_v9 = vld [vmem:[#allocation4 + $0x8] sm:$0xff]  ;;  %v148_v11 = vld [vmem:[#allocation10 + $0x10] sm:$0xff] }
  0x17   :  { %109 = vmatpush.msra.mxu0 %v87_v3  ;;  %v149_v10 = vld [vmem:[#allocation10 + $0x18] sm:$0xff]  ;;  %v147_v12 = vld [vmem:[#allocation10 + $0x8] sm:$0xff]  ;;  %v146_v13 = vld [vmem:[#allocation10] sm:$0xff]  ;;  %vm219_vm1 = vcmp.le.s32.totalorder %v218_v22, %v216_v21 }
  0x18   :  { %137 = vmatpush.msra.mxu1 %v120_v4  ;;  %162 = vmatpush.msra.mxu2 %v149_v10 }
  0x19   :  { %110 = vmatpush.msra.mxu0 %v86_v5 }
  0x1a   :  { %138 = vmatpush.msra.mxu1 %v119_v6  ;;  %163 = vmatpush.msra.mxu2 %v148_v11 }
  0x1b   :  { %111 = vmatpush.msra.mxu0 %v85_v7  ;;  %346 = vmatmul.msk.f32.vlgmr.msra.gmra.mxu1 %vm89_vm0, %v83_v8 }
  0x1c   :  { %344 = vmatmul.msk.f32.vlgmr.msra.gmra.mxu0 %vm89_vm0, %v83_v8  ;;  %164 = vmatpush.msra.mxu2 %v147_v12 }
  0x1e   :  { %165 = vmatpush.msra.mxu2 %v146_v13 }
  0x1f   :  { %348 = vmatmul.msk.f32.vlgmr.msra.gmra.mxu2 %vm89_vm0, %v83_v8 }
  0x23   :  { %347 = vmatmul.msk.f32.gmra.mxu1 %vm89_vm0, %v84_v9 }
  0x24   :  { %345 = vmatmul.msk.f32.gmra.mxu0 %vm89_vm0, %v84_v9 }
  0x27   :  { %349 = vmatmul.msk.f32.gmra.mxu2 %vm89_vm0, %v84_v9 }
  0x98   :  { %v140_v14 = vpop.f32.mrf.mxu1 }
  0x99   :  { %v113_v15 = vpop.f32.mrf.mxu0  ;;  %190 = vmatpush.xpose.msra.mxu3 %v140_v14 }
  0x9a   :  { %v173_v16 = vmul.f32 0.25, %v113_v15 }
  0x9c   :  { %191 = vmatmul.f32.vlgmr.msra.gmra.mxu3 %v173_v16 }
  0xa0   :  { %v143_v17 = vpop.f32.mrf.mxu1 }
  0xa1   :  { %v116_v18 = vpop.f32.mrf.mxu0  ;;  %210 = vmatpush.xpose.msrb.mxu3 %v143_v17 }
  0xa2   :  { %v174_v19 = vmul.f32 0.25, %v116_v18  ;;  %v167_v29 = vpop.f32.mrf.mxu2 }
  0xa4   :  { %211 = vmatmul.f32.vlgmr.msrb.gmra.mxu3 %v174_v19 }
  0xa5   :  { %261 = vmatpush.msra.mxu3 %v167_v29 }
  0xaa   :  { %v170_v30 = vpop.f32.mrf.mxu2 }
  0xab   :  { %284 = vmatpush.msrb.mxu0 %v170_v30 }
 0x11f   :  { %v192_v23 = vpop.f32.mrf.mxu3 }
 0x120   :  { %v222_v24 = vsel %vm219_vm1, %v192_v23, -1e+30 }
 0x121   :  { %v225_v25 = vsel %vm224_vm2, %v222_v24, -inf }
 0x122   :  { %226 = vmax.xlane.f32.xlu0 %v225_v25 }
 0x127   :  { %v212_v26 = vpop.f32.mrf.mxu3 }
 0x128   :  { %v223_v27 = vsel %vm219_vm1, %v212_v26, -1e+30 }
 0x129   :  { %v228_v28 = vsel %vm224_vm2, %v223_v27, -inf }
 0x12a   :  { %229 = vmax.xlane.f32.xlu0 %v228_v28 }
 0x195   :  { %v227_v31 = vpop.xlane.xlu0 %226 }
 0x196   :  { %v231_v32 = vsub.f32 %v222_v24, %v227_v31 }
 0x198   :  { %v233_v33 = vmul.f32 1.442695, %v231_v32 }
 0x19a   :  { %359 = vpow2.f32 %v233_v33 }
 0x19d   :  { %v230_v34 = vpop.xlane.xlu0 %229 }
 0x19e   :  { %v232_v35 = vsub.f32 %v223_v27, %v230_v34 }
 0x1a0   :  { %v360_v36 = vpop.eup %359  ;;  %v235_v37 = vmul.f32 1.442695, %v232_v35 }
 0x1a1   :  { %350 = vmatmul.msk.f32.vlgmr.msra.gmra.mxu3 %vm224_vm2, %v360_v36  ;;  %v237_v38 = vsel %vm224_vm2, %v360_v36, 0.0 }
 0x1a2   :  { %361 = vpow2.f32 %v235_v37  ;;  %238 = vadd.xlane.f32.xlu1 %v237_v38 }
 0x1a8   :  { %v362_v39 = vpop.eup %361 }
 0x1a9   :  { %351 = vmatmul.msk.f32.vlgmr.msrb.gmra.mxu0 %vm224_vm2, %v362_v39  ;;  %v240_v40 = vsel %vm224_vm2, %v362_v39, 0.0 }
 0x1aa   :  { %241 = vadd.xlane.f32.xlu1 %v240_v40 }
 0x215   :  { %v239_v41 = vpop.xlane.xlu1 %238 }
 0x216   :  { %363 = vrcp.f32 %v239_v41  ;;  %v300_v46 = vand.u32 2147483648, %v239_v41  ;;  %v298_v48 = vand.u32 2147483647, %v239_v41  ;;  %vm294_vm4 = vweird.f32 %v239_v41 }
 0x218   :  { %v301_v51 = vor.u32 1.1754944e-38, %v300_v46  ;;  %vm299_vm6 = vcmp.eq.f32.partialorder %v298_v48, 8.507059e+37 }
 0x21c   :  { %v364_v42 = vpop.eup %363 }
 0x21d   :  { %v290_v43 = vmul.f32 %v364_v42, %v239_v41  ;;  %v242_v44 = vpop.xlane.xlu1 %241  ;;  %vm295_vm3 = vweird.f32 %v364_v42 }
 0x21e   :  { %365 = vrcp.f32 %v242_v44  ;;  %vm296_vm5 = vmor %vm294_vm4, %vm295_vm3  ;;  %v315_v58 = vand.u32 2147483648, %v242_v44  ;;  %v313_v60 = vand.u32 2147483647, %v242_v44  ;;  %vm309_vm8 = vweird.f32 %v242_v44 }
 0x21f   :  { %v291_v45 = vsub.f32 1.0, %v290_v43 }
 0x220   :  { %v316_v62 = vor.u32 1.1754944e-38, %v315_v58  ;;  %vm314_vm10 = vcmp.eq.f32.partialorder %v313_v60, 8.507059e+37 }
 0x221   :  { %v292_v47 = vmul.f32 %v364_v42, %v291_v45 }
 0x223   :  { %v293_v49 = vadd.f32 %v364_v42, %v292_v47 }
 0x224   :  { %v366_v50 = vpop.eup %365  ;;  %v263_v54 = vpop.f32.mrf.mxu3 }
 0x225   :  { %v305_v52 = vmul.f32 %v366_v50, %v242_v44  ;;  %v297_v53 = vsel %vm296_vm5, %v364_v42, %v293_v49  ;;  %vm310_vm7 = vweird.f32 %v366_v50 }
 0x226   :  { %v302_v55 = vsel %vm299_vm6, %v301_v51, %v297_v53  ;;  %vm311_vm9 = vmor %vm309_vm8, %vm310_vm7  ;;  %v286_v0 = vpop.f32.mrf.mxu0 }
 0x227   :  { %v306_v56 = vsub.f32 1.0, %v305_v52  ;;  %v319_v57 = vmul.f32 %v302_v55, %v263_v54 }
 0x229   :  { %v307_v59 = vmul.f32 %v366_v50, %v306_v56  ;;  %321 = vst [vmem:[#allocation12] sm:$0xff] %v319_v57 }
 0x22b   :  { %v308_v61 = vadd.f32 %v366_v50, %v307_v59 }
 0x22d   :  { %v312_v63 = vsel %vm311_vm9, %v366_v50, %v308_v61 }
 0x22e   :  { %v317_v1 = vsel %vm314_vm10, %v316_v62, %v312_v63 }
 0x22f   :  { %v320_v2 = vmul.f32 %v317_v1, %v286_v0 }
 0x231   :  { %322 = vst [vmem:[#allocation12 + $0x8] sm:$0xff] %v320_v2 }
 0x232   :  { %335 = dma.vmem_to_hbm [thread:$0]  %s328_s11, 256, %s330_s14, [#allocation6], %s496_s25, %s496_s25, %s497_s26  }
 0x233   :  { %493 = dma.done.wait [#allocation6], 256  }
 0x234   :  { %494 = vsyncadd [#allocation6], 4294967040 }
 0x235   :  { %340 = vsyncpa [#allocation5], 1 }
 0x236   :  { %341 = vsyncpa [#allocation8], 1 }
 0x237   :  { %342 = vsyncpa [#allocation11], 1 }
 0x238   :  { %343 = vsyncpa [#allocation6], 1 }

</bundles_post_ra>
